<compile_context>
chip_gen: v5e
topology: v5e:2x2
jax: 0.10.0
libtpu: 0.0.40
codegen_flags: <defaults>
</compile_context>

<pallas_src>
import functools

import jax
import jax.numpy as jnp
from jax.experimental import pallas as pl
from jax.experimental.pallas import tpu as pltpu

EPS = 1e-6


def _round_up(v, m):
    return -(-v // m) * m


def _layernorm_kernel(x_ref, alpha_ref, bias_ref, o_ref, *, n_features):
    # x_ref: (TM, F) tile of rows; alpha_ref/bias_ref: (1, F).
    x = x_ref[...].astype(jnp.float32)

    n = jnp.float32(n_features)
    mean = jnp.sum(x, axis=-1, keepdims=True) / n
    diff = x - mean
    # torch.std default: unbiased (Bessel-corrected, ddof=1).
    # Two-pass form (sum of squared deviations) avoids the catastrophic
    # cancellation of the sumsq - n*mean^2 formulation.
    denom = jnp.float32(max(n_features - 1, 1))  # F==1 -> avoid /0 (torch: NaN)
    var = jnp.sum(diff * diff, axis=-1, keepdims=True) / denom
    std = jnp.sqrt(var)

    inv = pl.reciprocal(std + EPS)  # exact; EUP slot, frees VALU
    y = diff * inv * alpha_ref[...].astype(jnp.float32) \
        + bias_ref[...].astype(jnp.float32)
    o_ref[...] = y.astype(o_ref.dtype)


def _choose_tile(rows, f_lane):
    """Byte-targeted row tile + VMEM limit for this chip generation.

    f_lane: per-row lane footprint (F rounded up to 128) used for VMEM math.
    Returns (tm, vmem_limit_bytes).
    """
    row_bytes = 4 * f_lane  # f32 VMEM footprint of one row

    # Per-generation budgets.  Working set per step is roughly
    # 2x(in tile) + 2x(out tile) + elementwise temporaries.
    phys_vmem = None
    try:
        phys_vmem = pltpu.get_tpu_info().vmem_capacity_bytes
    except Exception:  # unknown chip / query unavailable -> conservative
        phys_vmem = None

    if phys_vmem is not None and phys_vmem >= 96 * 1024 * 1024:
        # v5e / v6e: 128 MiB physical VMEM -> bigger tiles; raise the scoped
        # limit above v5e's 16 MiB / v6e's 32 MiB defaults.
        tile_target = 8 * 1024 * 1024
        vmem_limit = 80 * 1024 * 1024
    else:
        # v7x (64 MiB VMEM) or unknown: keep the working set well under half
        # of physical VMEM, leaving headroom for compiler temporaries.
        tile_target = 4 * 1024 * 1024
        vmem_limit = 40 * 1024 * 1024

    tm = max(8, (tile_target // row_bytes) // 8 * 8)
    # Hard cap: ~8 tile-sized buffers (2 in + 2 out pipeline buffers plus
    # temporaries) must fit inside 90% of the scoped limit.
    tm_cap = max(8, int(0.9 * vmem_limit // (8 * row_bytes)) // 8 * 8)
    tm = min(tm, tm_cap)
    # No point tiling beyond the whole array (single step for small inputs).
    tm = min(tm, _round_up(rows, 8))

    # v7x megacore: keep the grid step count even so neither TensorCore idles
    # on a tail step.  On 1-TC chips this costs at most one extra cheap step.
    steps = -(-rows // tm)
    if steps > 1 and steps % 2 == 1:
        tm = max(8, _round_up(-(-rows // (steps + 1)), 8))

    return tm, vmem_limit


def encoder_forward(x, mask, alpha, bias):
    """Encoder.forward: run layer stack (identity here) then LayerNorm.

    x:     (B, S, F) float32
    mask:  attention mask, unused by the (empty) layer stack
    alpha: (F,) scale, bias: (F,) shift
    """
    # TODO(synk): the ModuleList `layers` has no definition in the provided
    # source; the loop over layers is an identity pass here.
    del mask

    B, S, F = x.shape
    rows = B * S

    x2 = x.reshape(rows, F)
    alpha2 = alpha.reshape(1, F)
    bias2 = bias.reshape(1, F)

    f_lane = _round_up(F, 128)  # physical lane footprint (for VMEM math only)
    tm, vmem_limit = _choose_tile(rows, f_lane)
    grid = (pl.cdiv(rows, tm),)

    kernel = functools.partial(_layernorm_kernel, n_features=F)

    out = pl.pallas_call(
        kernel,
        out_shape=jax.ShapeDtypeStruct((rows, F), x.dtype),
        grid=grid,
        in_specs=[
            # Feature block == full F: no wrapper pad / output slice needed.
            pl.BlockSpec((tm, F), lambda i: (i, 0)),
            pl.BlockSpec((1, F), lambda i: (0, 0)),
            pl.BlockSpec((1, F), lambda i: (0, 0)),
        ],
        out_specs=pl.BlockSpec((tm, F), lambda i: (i, 0)),
        compiler_params=pltpu.CompilerParams(
            dimension_semantics=("parallel",),
            vmem_limit_bytes=vmem_limit,
        ),
    )(x2, alpha2, bias2)

    return out.reshape(B, S, F)


def _reference(x, alpha, bias):
    # Pure-JAX reference matching the PyTorch semantics (unbiased std).
    mean = jnp.mean(x, axis=-1, keepdims=True)
    diff = x - mean
    var = jnp.sum(diff * diff, axis=-1, keepdims=True) / (x.shape[-1] - 1)
    std = jnp.sqrt(var)
    return alpha * diff / (std + EPS) + bias


if __name__ == "__main__":
    B, S, F = 2, 8, 128  # batch, seq, n_features

    key = jax.random.PRNGKey(0)
    kx, km = jax.random.split(key)
    x = jax.random.normal(kx, (B, S, F), dtype=jnp.float32)
    mask = (jax.random.uniform(km, (B, 1, S, S)) > 0.5).astype(jnp.float32)

    # Deterministic parameter init mirroring nn.Parameter(ones/zeros).
    alpha = jnp.ones((F,), dtype=jnp.float32)
    bias = jnp.zeros((F,), dtype=jnp.float32)

    y = encoder_forward(x, mask, alpha, bias)
    y = jax.block_until_ready(y)

    y_ref = _reference(x, alpha, bias)
    assert y.shape == (B, S, F)
    assert jnp.allclose(y, y_ref, atol=1e-5, rtol=1e-5)

    print("KERNEL_OK")
</pallas_src>

<mosaic_0001>
module attributes {stable_mosaic.version = 11 : i64} {
  func.func @_layernorm_kernel(%arg0: i32, %arg1: memref<16x128xf32, #tpu.memory_space<vmem>>, %arg2: memref<1x128xf32, #tpu.memory_space<vmem>>, %arg3: memref<1x128xf32, #tpu.memory_space<vmem>>, %arg4: memref<16x128xf32, #tpu.memory_space<vmem>>) attributes {dimension_semantics = [#tpu.dimension_semantics<parallel>], iteration_bounds = array<i64: 1>, scalar_prefetch = 0 : i64, scratch_operands = 0 : i64, tpu.core_type = #tpu.core_type<tc>, window_params = [{transform_indices = @transform_0, window_bounds = array<i64: 16, 128>}, {pipeline_mode = #tpu.pipeline_mode<synchronous>, transform_indices = @transform_1, window_bounds = array<i64: 1, 128>}, {pipeline_mode = #tpu.pipeline_mode<synchronous>, transform_indices = @transform_2, window_bounds = array<i64: 1, 128>}, {transform_indices = @transform_3, window_bounds = array<i64: 16, 128>}]} {
    %c0 = arith.constant 0 : index
    %c0_0 = arith.constant 0 : index
    %0 = vector.load %arg1[%c0, %c0_0] : memref<16x128xf32, #tpu.memory_space<vmem>>, vector<16x128xf32>
    %cst = arith.constant dense<0.000000e+00> : vector<16xf32>
    %1 = vector.multi_reduction <add>, %0, %cst [1] : vector<16x128xf32> to vector<16xf32>
    %2 = vector.shape_cast %1 : vector<16xf32> to vector<16x1xf32>
    %cst_1 = arith.constant 1.280000e+02 : f32
    %3 = vector.broadcast %cst_1 : f32 to vector<16x1xf32>
    %4 = arith.divf %2, %3 : vector<16x1xf32>
    %5 = vector.broadcast %4 : vector<16x1xf32> to vector<16x128xf32>
    %6 = arith.subf %0, %5 : vector<16x128xf32>
    %7 = arith.mulf %6, %6 : vector<16x128xf32>
    %cst_2 = arith.constant dense<0.000000e+00> : vector<16xf32>
    %8 = vector.multi_reduction <add>, %7, %cst_2 [1] : vector<16x128xf32> to vector<16xf32>
    %9 = vector.shape_cast %8 : vector<16xf32> to vector<16x1xf32>
    %cst_3 = arith.constant 1.270000e+02 : f32
    %10 = vector.broadcast %cst_3 : f32 to vector<16x1xf32>
    %11 = arith.divf %9, %10 : vector<16x1xf32>
    %12 = math.sqrt %11 : vector<16x1xf32>
    %cst_4 = arith.constant 9.99999997E-7 : f32
    %13 = vector.broadcast %cst_4 : f32 to vector<16x1xf32>
    %14 = arith.addf %12, %13 : vector<16x1xf32>
    %15 = tpu.reciprocal %14 : vector<16x1xf32> -> vector<16x1xf32>
    %16 = vector.broadcast %15 : vector<16x1xf32> to vector<16x128xf32>
    %17 = arith.mulf %6, %16 : vector<16x128xf32>
    %c0_5 = arith.constant 0 : index
    %c0_6 = arith.constant 0 : index
    %18 = vector.load %arg2[%c0_5, %c0_6] : memref<1x128xf32, #tpu.memory_space<vmem>>, vector<1x128xf32>
    %19 = vector.broadcast %18 : vector<1x128xf32> to vector<16x128xf32>
    %20 = arith.mulf %17, %19 : vector<16x128xf32>
    %c0_7 = arith.constant 0 : index
    %c0_8 = arith.constant 0 : index
    %21 = vector.load %arg3[%c0_7, %c0_8] : memref<1x128xf32, #tpu.memory_space<vmem>>, vector<1x128xf32>
    %22 = vector.broadcast %21 : vector<1x128xf32> to vector<16x128xf32>
    %23 = arith.addf %20, %22 : vector<16x128xf32>
    %c0_9 = arith.constant 0 : index
    %c0_10 = arith.constant 0 : index
    %24 = vector.load %arg4[%c0_9, %c0_10] : memref<16x128xf32, #tpu.memory_space<vmem>>, vector<16x128xf32>
    tpu.vector_store %arg4[%c0_9, %c0_10], %23 {strides = array<i32>} : memref<16x128xf32, #tpu.memory_space<vmem>>, vector<16x128xf32>,
    return
  }
  func.func @transform_0(%arg0: i32) -> (i32, i32) {
    %c0_i32 = arith.constant 0 : i32
    %c0_i32_0 = arith.constant 0 : i32
    return %arg0, %c0_i32 : i32, i32
  }
  func.func @transform_1(%arg0: i32) -> (i32, i32) {
    %c0_i32 = arith.constant 0 : i32
    %c0_i32_0 = arith.constant 0 : i32
    %c0_i32_1 = arith.constant 0 : i32
    return %c0_i32, %c0_i32_0 : i32, i32
  }
  func.func @transform_2(%arg0: i32) -> (i32, i32) {
    %c0_i32 = arith.constant 0 : i32
    %c0_i32_0 = arith.constant 0 : i32
    %c0_i32_1 = arith.constant 0 : i32
    return %c0_i32, %c0_i32_0 : i32, i32
  }
  func.func @transform_3(%arg0: i32) -> (i32, i32) {
    %c0_i32 = arith.constant 0 : i32
    %c0_i32_0 = arith.constant 0 : i32
    return %arg0, %c0_i32 : i32, i32
  }
}

</mosaic_0001>

<bundles_post_ra>
// kernel: tpu_custom_call.1
= control target key start
LH: loop header
LB: loop body
LE: loop exit
PB: predicated region body
PF: predicated region fallthrough
CT: control target
= control target key end

     0   :  { %8 = vsyncpa [#allocation3], 0  ;;  %s321_s0 = inlined_call_operand.hbm [shape: f32[16,128], index: 0, kind: input, shape index: {}]   ;;  %s322_s1 = inlined_call_operand.hbm [shape: f32[1,128], index: 1, kind: input, shape index: {}]   ;;  %s323_s2 = inlined_call_operand.vmem [shape: f32[1,128], index: 2, kind: input, shape index: {}]   ;;  %s324_s3 = inlined_call_operand.hbm [shape: f32[16,128], index: 3, kind: output, shape index: {}]  }
   0x1   :  { %9 = vsyncpa [#allocation6], 0 }
   0x2   :  { %10 = vsyncpa [#allocation4], 0  ;;  %s15_s14 = sshll.u32 %s321_s0, 4  ;;  %s266_s15 = smov [#allocation2]   ;;  %s16_s14 = int_to_ptr.hbm [resolvable:$true] %s15_s14 }
   0x3   :  { %s17_s16 = sshll.u32 %s266_s15, 4  ;;  %s29_s19 = sshll.u32 %s322_s1, 4  ;;  %s18_s16 = int_to_ptr.vmem [resolvable:$true] %s17_s16  ;;  %s30_s19 = int_to_ptr.hbm [resolvable:$true] %s29_s19 }
   0x4   :  { %s267_s20 = smov 128   ;;  %s268_s21 = smov 8  }
   0x5   :  { %23 = dma.hbm_to_vmem [thread:$0]  %s16_s14, 256, %s18_s16, [#allocation3], %s267_s20, %s267_s20, %s268_s21  }
   0x6   :  { %s269_s22 = smov [#allocation5]  }
   0x7   :  { %s31_s23 = sshll.u32 %s269_s22, 4  ;;  %s32_s23 = int_to_ptr.vmem [resolvable:$true] %s31_s23 }
   0x8   :  { %34 = dma.hbm_to_vmem [thread:$0]  %s30_s19, 16, %s32_s23, [#allocation6]  }
   0x9   :  { %260 = dma.done.wait [#allocation3], 256  }
   0xa   :  { %261 = vsyncadd [#allocation3], 4294967040 }
   0xb   :  { %262 = dma.done.wait [#allocation6], 16  }
   0xc   :  { %263 = vsyncadd [#allocation6], 4294967280  ;;  %v45_v0 = vld [vmem:[#allocation2] sm:$0xff]  ;;  %v46_v1 = vld [vmem:[#allocation2 + $0x8] sm:$0xff]  ;;  %v270_v2 = vmov 128.0   ;;  %v271_v17 = vmov 127.0  }
   0xd   :  { %47 = vadd.xlane.f32.xlu0 %v45_v0  ;;  %176 = vrcp.f32 %v270_v2  ;;  %v174_v61 = vld [vmem:[#allocation5] ss:$0 sm:$0xff]  ;;  %s272_s24 = smov [#allocation7]   ;;  %s153_s27 = sshll.u32 %s324_s3, 4  ;;  %s154_s27 = int_to_ptr.hbm [resolvable:$true] %s153_s27 }
   0xe   :  { %178 = vrcp.f32 %v271_v17  ;;  %s151_s25 = sshll.u32 %s272_s24, 4  ;;  %s152_s25 = int_to_ptr.vmem [resolvable:$true] %s151_s25 }
  0x13   :  { %v177_v3 = vpop.eup %176 }
  0x14   :  { %v52_v4 = vmul.f32 128.0, %v177_v3  ;;  %vm56_vm0 = vweird.f32 %v177_v3  ;;  %v179_v18 = vpop.eup %178 }
  0x15   :  { %49 = vadd.xlane.f32.xlu0 %v46_v1  ;;  %v69_v19 = vmul.f32 127.0, %v179_v18  ;;  %vm73_vm1 = vweird.f32 %v179_v18 }
  0x16   :  { %v53_v5 = vsub.f32 1.0, %v52_v4 }
  0x17   :  { %v70_v20 = vsub.f32 1.0, %v69_v19 }
  0x18   :  { %v54_v6 = vmul.f32 %v177_v3, %v53_v5 }
  0x19   :  { %v71_v21 = vmul.f32 %v179_v18, %v70_v20 }
  0x1a   :  { %v55_v7 = vadd.f32 %v177_v3, %v54_v6 }
  0x1b   :  { %v72_v22 = vadd.f32 %v179_v18, %v71_v21 }
  0x1c   :  { %v57_v8 = vsel %vm56_vm0, %v177_v3, %v55_v7 }
  0x1d   :  { %v74_v23 = vsel %vm73_vm1, %v179_v18, %v72_v22 }
  0x80   :  { %v48_v9 = vpop.xlane.xlu0 %47 }
  0x81   :  { %v58_v10 = vmul.f32 %v57_v8, %v48_v9 }
  0x83   :  { %v302_v11 = vsub.f32 %v45_v0, %v58_v10 }
  0x85   :  { %v62_v12 = vmul.f32 %v302_v11, %v302_v11 }
  0x87   :  { %64 = vadd.xlane.f32.xlu1 %v62_v12 }
  0x88   :  { %v50_v13 = vpop.xlane.xlu0 %49 }
  0x89   :  { %v59_v14 = vmul.f32 %v57_v8, %v50_v13 }
  0x8b   :  { %v306_v15 = vsub.f32 %v46_v1, %v59_v14  ;;  %v175_v1 = vld [vmem:[%s323_s2] ss:$0 sm:$0xff] }
  0x8d   :  { %v63_v16 = vmul.f32 %v306_v15, %v306_v15 }
  0x8f   :  { %66 = vadd.xlane.f32.xlu1 %v63_v16 }
  0xfa   :  { %v65_v24 = vpop.xlane.xlu1 %64 }
  0xfb   :  { %v75_v25 = vmul.f32 %v74_v23, %v65_v24 }
  0xfd   :  { %180 = vrsqrt.f32 %v75_v25  ;;  %vm84_vm2 = vcmp.eq.f32.partialorder %v75_v25, inf  ;;  %v87_v38 = vand.u32 2147483648, %v75_v25  ;;  %vm86_vm3 = vcmp.eq.f32.partialorder %v75_v25, 0.0 }
 0x102   :  { %v67_v26 = vpop.xlane.xlu1 %66 }
 0x103   :  { %v181_v27 = vpop.eup %180  ;;  %v76_v28 = vmul.f32 %v74_v23, %v67_v26 }
 0x104   :  { %v78_v29 = vmul.f32 %v181_v27, %v75_v25 }
 0x105   :  { %182 = vrsqrt.f32 %v76_v28  ;;  %vm96_vm4 = vcmp.eq.f32.partialorder %v76_v28, inf  ;;  %v99_v46 = vand.u32 2147483648, %v76_v28  ;;  %vm98_vm5 = vcmp.eq.f32.partialorder %v76_v28, 0.0 }
 0x106   :  { %v79_v30 = vmul.f32 %v181_v27, %v78_v29 }
 0x108   :  { %v80_v31 = vmul.f32 0.5, %v79_v30 }
 0x10a   :  { %v81_v32 = vsub.f32 1.5, %v80_v31 }
 0x10b   :  { %v183_v33 = vpop.eup %182 }
 0x10c   :  { %v82_v34 = vmul.f32 %v181_v27, %v81_v32  ;;  %v90_v35 = vmul.f32 %v183_v33, %v76_v28 }
 0x10e   :  { %v83_v36 = vmul.f32 %v82_v34, %v75_v25  ;;  %v91_v37 = vmul.f32 %v183_v33, %v90_v35 }
 0x110   :  { %v85_v39 = vsel %vm84_vm2, %v75_v25, %v83_v36  ;;  %v92_v40 = vmul.f32 0.5, %v91_v37 }
 0x111   :  { %v88_v41 = vsel %vm86_vm3, %v87_v38, %v85_v39 }
 0x112   :  { %v101_v42 = vadd.f32 1e-06, %v88_v41  ;;  %v93_v43 = vsub.f32 1.5, %v92_v40 }
 0x114   :  { %184 = vrcp.f32 %v101_v42  ;;  %v94_v44 = vmul.f32 %v183_v33, %v93_v43  ;;  %v114_v53 = vand.u32 2147483648, %v101_v42  ;;  %v112_v55 = vand.u32 2147483647, %v101_v42 }
 0x115   :  { %vm108_vm7 = vweird.f32 %v101_v42 }
 0x116   :  { %v95_v45 = vmul.f32 %v94_v44, %v76_v28  ;;  %v115_v58 = vor.u32 1.1754944e-38, %v114_v53  ;;  %vm113_vm9 = vcmp.eq.f32.partialorder %v112_v55, 8.507059e+37 }
 0x118   :  { %v97_v47 = vsel %vm96_vm4, %v76_v28, %v95_v45 }
 0x119   :  { %v100_v48 = vsel %vm98_vm5, %v99_v46, %v97_v47 }
 0x11a   :  { %v185_v49 = vpop.eup %184  ;;  %v102_v50 = vadd.f32 1e-06, %v100_v48 }
 0x11b   :  { %v104_v51 = vmul.f32 %v185_v49, %v101_v42  ;;  %vm109_vm6 = vweird.f32 %v185_v49 }
 0x11c   :  { %186 = vrcp.f32 %v102_v50  ;;  %vm110_vm8 = vmor %vm108_vm7, %vm109_vm6  ;;  %v128_v2 = vand.u32 2147483648, %v102_v50  ;;  %v126_v4 = vand.u32 2147483647, %v102_v50  ;;  %vm122_vm11 = vweird.f32 %v102_v50 }
 0x11d   :  { %v105_v52 = vsub.f32 1.0, %v104_v51 }
 0x11e   :  { %v129_v8 = vor.u32 1.1754944e-38, %v128_v2  ;;  %vm127_vm13 = vcmp.eq.f32.partialorder %v126_v4, 8.507059e+37 }
 0x11f   :  { %v106_v54 = vmul.f32 %v185_v49, %v105_v52 }
 0x121   :  { %v107_v56 = vadd.f32 %v185_v49, %v106_v54 }
 0x122   :  { %v187_v57 = vpop.eup %186 }
 0x123   :  { %v111_v59 = vsel %vm110_vm8, %v185_v49, %v107_v56  ;;  %v118_v60 = vmul.f32 %v187_v57, %v102_v50  ;;  %vm123_vm10 = vweird.f32 %v187_v57 }
 0x124   :  { %v116_v62 = vsel %vm113_vm9, %v115_v58, %v111_v59  ;;  %vm124_vm12 = vmor %vm122_vm11, %vm123_vm10 }
 0x125   :  { %v119_v63 = vsub.f32 1.0, %v118_v60  ;;  %v131_v0 = vmul.f32 %v116_v62, %v302_v11 }
 0x127   :  { %v120_v3 = vmul.f32 %v187_v57, %v119_v63  ;;  %v137_v5 = vmul.f32 %v174_v61, %v131_v0 }
 0x129   :  { %v121_v6 = vadd.f32 %v187_v57, %v120_v3  ;;  %v143_v7 = vadd.f32 %v175_v1, %v137_v5 }
 0x12b   :  { %v125_v9 = vsel %vm124_vm12, %v187_v57, %v121_v6  ;;  %145 = vst [vmem:[#allocation7] sm:$0xff] %v143_v7 }
 0x12c   :  { %v130_v10 = vsel %vm127_vm13, %v129_v8, %v125_v9 }
 0x12d   :  { %v132_v11 = vmul.f32 %v130_v10, %v306_v15 }
 0x12f   :  { %v138_v12 = vmul.f32 %v174_v61, %v132_v11 }
 0x131   :  { %v144_v13 = vadd.f32 %v175_v1, %v138_v12 }
 0x133   :  { %146 = vst [vmem:[#allocation7 + $0x8] sm:$0xff] %v144_v13 }
 0x134   :  { %159 = dma.vmem_to_hbm [thread:$0]  %s152_s25, 256, %s154_s27, [#allocation4], %s267_s20, %s267_s20, %s268_s21  }
 0x135   :  { %264 = dma.done.wait [#allocation4], 256  }
 0x136   :  { %265 = vsyncadd [#allocation4], 4294967040 }
 0x137   :  { %164 = vsyncpa [#allocation3], 1 }
 0x138   :  { %165 = vsyncpa [#allocation6], 1 }
 0x139   :  { %166 = vsyncpa [#allocation4], 1 }

</bundles_post_ra>
